<compile_context>
chip_gen: v5e
topology: v5e:2x2
jax: 0.10.0
libtpu: 0.0.40
codegen_flags: <defaults>
</compile_context>

<pallas_src>
import functools

import jax
import jax.numpy as jnp
from jax.experimental import pallas as pl
from jax.experimental.pallas import tpu as pltpu

LANE = 128
_MAX_BATCH_TILE = 1024   # sweepable (1024-2048); keeps per-step work >> per-step overhead


def _round_up(n, m):
    return ((n + m - 1) // m) * m


def _vmem_cap_bytes():
    """Generation-aware VMEM request cap: leave headroom below physical capacity."""
    try:
        cap = int(pltpu.get_tpu_info().vmem_capacity_bytes)
        return max((cap * 3) // 4, 16 << 20)   # ~48 MiB on v7x, ~96 MiB on v5e/v6e
    except Exception:
        return 48 << 20                        # conservative default that fits v7x's 64 MiB/TC


# --------------------------------------------------------------------------------------
# Kernel: fully fused 3-layer MLP for one batch tile. Weights/biases are resident blocks.
# --------------------------------------------------------------------------------------
def scaling_net_kernel(x_ref, w1_ref, b1_ref, w2_ref, b2_ref, w3_ref, b3_ref, o_ref):
    x = x_ref[...].astype(w1_ref.dtype)                                  # in-kernel cast (f32->bf16 fast path)
    h1 = jnp.dot(x, w1_ref[...], preferred_element_type=jnp.float32) + b1_ref[...]
    h1 = jnp.maximum(h1, 0.0).astype(w2_ref.dtype)                       # (bt, width_p)
    h2 = jnp.dot(h1, w2_ref[...], preferred_element_type=jnp.float32) + b2_ref[...]
    h2 = jnp.maximum(h2, 0.0).astype(w3_ref.dtype)                       # (bt, width_p)
    out = jnp.dot(h2, w3_ref[...], preferred_element_type=jnp.float32) + b3_ref[...]
    o_ref[...] = jnp.exp(jnp.tanh(out)).astype(o_ref.dtype)              # (bt, out_f)


# --------------------------------------------------------------------------------------
# One-time parameter preparation: pad hidden width to a lane multiple, optional bf16 cast.
# Input / output feature dims are left unpadded (full-dim blocks in the kernel).
# --------------------------------------------------------------------------------------
def prepare_params(params, *, use_bf16=True):
    w1, b1, w2, b2, w3, b3 = (params[k] for k in ("w1", "b1", "w2", "b2", "w3", "b3"))
    in_f, width = w1.shape
    out_f = w3.shape[1]
    width_p = _round_up(width, LANE)
    wdt = jnp.bfloat16 if use_bf16 else jnp.float32

    def pad2(a, rows, cols, dtype):
        return jnp.pad(a, ((0, rows - a.shape[0]), (0, cols - a.shape[1]))).astype(dtype)

    prepared = {
        "w1": pad2(w1, in_f, width_p, wdt),
        "b1": pad2(b1, 1, width_p, jnp.float32),    # biases stay f32 (added post-accumulation)
        "w2": pad2(w2, width_p, width_p, wdt),
        "b2": pad2(b2, 1, width_p, jnp.float32),
        "w3": pad2(w3, width_p, out_f, wdt),        # output feature dim left unpadded
        "b3": pad2(b3, 1, out_f, jnp.float32),
    }
    meta = dict(in_features=in_f, out_features=out_f, width=width,
                width_p=width_p, compute_dtype=wdt)
    return prepared, meta


# --------------------------------------------------------------------------------------
# pallas_call wrapper: cdiv grid over batch tiles, resident (optionally single-buffered)
# weights, cost estimate, generation-aware VMEM budget.
# --------------------------------------------------------------------------------------
@functools.partial(jax.jit, static_argnames=("bt", "single_buffer"))
def _forward_impl(x, w1, b1, w2, b2, w3, b3, *, bt, single_buffer):
    B, in_f = x.shape
    width_p = w1.shape[1]
    out_f = w3.shape[1]
    grid = (pl.cdiv(B, bt),)

    if single_buffer:
        def resident(shape):
            return pl.BlockSpec(shape, lambda i: (0, 0), pipeline_mode=pl.Buffered(1))
    else:
        def resident(shape):
            return pl.BlockSpec(shape, lambda i: (0, 0))

    w_item = jnp.dtype(w1.dtype).itemsize

    # Advisory cost for XLA's scheduler.
    flops = 2 * B * (in_f * width_p + width_p * width_p + width_p * out_f)
    transcendentals = 2 * B * out_f            # tanh + exp per output element
    bytes_accessed = (x.size * x.dtype.itemsize
                      + (w1.size + w2.size + w3.size) * w_item
                      + (b1.size + b2.size + b3.size) * 4
                      + B * out_f * 4)
    cost = pl.CostEstimate(flops=flops, transcendentals=transcendentals,
                           bytes_accessed=bytes_accessed)

    # VMEM budget: resident weights (1x or 2x buffered) + double-buffered x/out tiles +
    # f32 intermediates + headroom; capped below the generation's physical VMEM.
    param_bytes = ((w1.size + w2.size + w3.size) * w_item
                   + (b1.size + b2.size + b3.size) * 4)
    needed = ((1 if single_buffer else 2) * param_bytes
              + 2 * bt * in_f * 4
              + 2 * bt * out_f * 4
              + 2 * bt * width_p * 4
              + (4 << 20))
    vmem_limit = int(min(max(needed, 32 << 20), _vmem_cap_bytes()))

    return pl.pallas_call(
        scaling_net_kernel,
        out_shape=jax.ShapeDtypeStruct((B, out_f), jnp.float32),
        grid_spec=pltpu.PrefetchScalarGridSpec(
            num_scalar_prefetch=0,
            grid=grid,
            in_specs=[
                pl.BlockSpec((bt, in_f), lambda i: (i, 0)),   # x tile (full-last-dim block)
                resident((in_f, width_p)),                    # w1
                resident((1, width_p)),                       # b1
                resident((width_p, width_p)),                 # w2
                resident((1, width_p)),                       # b2
                resident((width_p, out_f)),                   # w3
                resident((1, out_f)),                         # b3
            ],
            out_specs=pl.BlockSpec((bt, out_f), lambda i: (i, 0)),
        ),
        compiler_params=pltpu.CompilerParams(
            dimension_semantics=("parallel",),   # shard batch tiles across v7x's 2 TensorCores
            vmem_limit_bytes=vmem_limit,
        ),
        cost_estimate=cost,
    )(x, w1, b1, w2, b2, w3, b3)


def _choose_batch_tile(B, pack, max_tile):
    """Tile rows: multiple of `pack`, capped at max_tile, >=2 tiles when batch allows (megacore)."""
    max_tile = max(_round_up(max_tile, pack), pack)
    Bp = _round_up(B, pack)          # granularity only; the batch itself is never padded
    if Bp > max_tile:
        return max_tile
    if Bp >= 2 * pack:
        return max(_round_up(pl.cdiv(Bp, 2), pack), pack)
    return Bp


_SINGLE_BUFFER_OK = [hasattr(pl, "Buffered")]


def scaling_net_forward(x, prepared, meta, *, batch_tile=_MAX_BATCH_TILE):
    """x: (B, in_features) float32. Returns (B, out_features) float32."""
    B, in_f = x.shape
    assert in_f == meta["in_features"]
    bf16 = jnp.dtype(meta["compute_dtype"]) == jnp.dtype(jnp.bfloat16)
    pack = 16 if bf16 else 8
    bt = _choose_batch_tile(B, pack, batch_tile)

    args = (x, prepared["w1"], prepared["b1"], prepared["w2"], prepared["b2"],
            prepared["w3"], prepared["b3"])
    if _SINGLE_BUFFER_OK[0]:
        try:
            return _forward_impl(*args, bt=bt, single_buffer=True)
        except Exception:
            _SINGLE_BUFFER_OK[0] = False   # fall back to default (double) buffering once
    return _forward_impl(*args, bt=bt, single_buffer=False)


# --------------------------------------------------------------------------------------
# Parameter init (mimics PyTorch nn.Linear default: U(+-1/sqrt(fan_in))) and pure-JAX reference.
# --------------------------------------------------------------------------------------
def init_params(key, in_features, out_features, width):
    def linear(k, fan_in, fan_out):
        kw, kb = jax.random.split(k)
        bound = 1.0 / jnp.sqrt(jnp.float32(fan_in))
        w = jax.random.uniform(kw, (fan_in, fan_out), jnp.float32, -bound, bound)  # == torch weight.T
        b = jax.random.uniform(kb, (1, fan_out), jnp.float32, -bound, bound)
        return w, b

    k1, k2, k3 = jax.random.split(key, 3)
    w1, b1 = linear(k1, in_features, width)
    w2, b2 = linear(k2, width, width)
    w3, b3 = linear(k3, width, out_features)
    return {"w1": w1, "b1": b1, "w2": w2, "b2": b2, "w3": w3, "b3": b3}


def reference_forward(x, p):
    h1 = jnp.maximum(x @ p["w1"] + p["b1"], 0.0)
    h2 = jnp.maximum(h1 @ p["w2"] + p["b2"], 0.0)
    return jnp.exp(jnp.tanh(h2 @ p["w3"] + p["b3"]))


if __name__ == "__main__":
    in_features, out_features, width = 16, 16, 32
    batch = 8

    key = jax.random.PRNGKey(0)
    kx, kp, kx2 = jax.random.split(key, 3)
    x = jax.random.normal(kx, (batch, in_features), jnp.float32)
    params = init_params(kp, in_features, out_features, width)

    # --- f32 path (tight tolerance) ---
    prep_f32, meta_f32 = prepare_params(params, use_bf16=False)
    out_f32 = jax.block_until_ready(scaling_net_forward(x, prep_f32, meta_f32))
    ref = jax.block_until_ready(reference_forward(x, params))
    assert out_f32.shape == (batch, out_features)
    assert jnp.allclose(out_f32, ref, atol=1e-5, rtol=1e-5), "f32 kernel mismatch vs reference"

    # --- bf16 fast path (loosened tolerance, expected precision loss) ---
    prep_bf16, meta_bf16 = prepare_params(params, use_bf16=True)
    out_bf16 = jax.block_until_ready(scaling_net_forward(x, prep_bf16, meta_bf16))
    assert out_bf16.shape == (batch, out_features)
    assert jnp.allclose(out_bf16, ref, atol=5e-2, rtol=5e-2), "bf16 kernel mismatch vs reference"

    # --- ragged / multi-tile batch (exercises cdiv grid > 1 and partial boundary blocks) ---
    x_big = jax.random.normal(kx2, (300, in_features), jnp.float32)
    out_big = jax.block_until_ready(scaling_net_forward(x_big, prep_bf16, meta_bf16))
    ref_big = jax.block_until_ready(reference_forward(x_big, params))
    assert out_big.shape == (300, out_features)
    assert jnp.allclose(out_big, ref_big, atol=5e-2, rtol=5e-2), "ragged-batch mismatch"

    print("KERNEL_OK")
</pallas_src>

<mosaic_0001>
module attributes {stable_mosaic.version = 11 : i64} {
  func.func @scaling_net_kernel(%arg0: i32, %arg1: memref<8x16xf32, #tpu.memory_space<vmem>>, %arg2: memref<16x128xf32, #tpu.memory_space<vmem>>, %arg3: memref<1x128xf32, #tpu.memory_space<vmem>>, %arg4: memref<128x128xf32, #tpu.memory_space<vmem>>, %arg5: memref<1x128xf32, #tpu.memory_space<vmem>>, %arg6: memref<128x16xf32, #tpu.memory_space<vmem>>, %arg7: memref<1x16xf32, #tpu.memory_space<vmem>>, %arg8: memref<8x16xf32, #tpu.memory_space<vmem>>) attributes {dimension_semantics = [#tpu.dimension_semantics<parallel>], iteration_bounds = array<i64: 1>, scalar_prefetch = 0 : i64, scratch_operands = 0 : i64, tpu.core_type = #tpu.core_type<tc>, window_params = [{transform_indices = @transform_0, window_bounds = array<i64: 8, 16>}, {pipeline_mode = #tpu.pipeline_mode<synchronous>, transform_indices = @transform_1, window_bounds = array<i64: 16, 128>}, {pipeline_mode = #tpu.pipeline_mode<synchronous>, transform_indices = @transform_2, window_bounds = array<i64: 1, 128>}, {pipeline_mode = #tpu.pipeline_mode<synchronous>, transform_indices = @transform_3, window_bounds = array<i64: 128, 128>}, {pipeline_mode = #tpu.pipeline_mode<synchronous>, transform_indices = @transform_4, window_bounds = array<i64: 1, 128>}, {pipeline_mode = #tpu.pipeline_mode<synchronous>, transform_indices = @transform_5, window_bounds = array<i64: 128, 16>}, {pipeline_mode = #tpu.pipeline_mode<synchronous>, transform_indices = @transform_6, window_bounds = array<i64: 1, 16>}, {transform_indices = @transform_7, window_bounds = array<i64: 8, 16>}]} {
    %c0 = arith.constant 0 : index
    %c0_0 = arith.constant 0 : index
    %0 = vector.load %arg1[%c0, %c0_0] : memref<8x16xf32, #tpu.memory_space<vmem>>, vector<8x16xf32>
    %c0_1 = arith.constant 0 : index
    %c0_2 = arith.constant 0 : index
    %1 = vector.load %arg2[%c0_1, %c0_2] : memref<16x128xf32, #tpu.memory_space<vmem>>, vector<16x128xf32>
    %cst = arith.constant dense<0.000000e+00> : vector<8x128xf32>
    %2 = tpu.matmul %0, %1, %cst {dimension_numbers = #tpu.dot_dimension_numbers<[1], [0], [0], [1], [0, 0, 1, 1], [], []>} : vector<8x16xf32>, vector<16x128xf32>, vector<8x128xf32> -> vector<8x128xf32>
    %c0_3 = arith.constant 0 : index
    %c0_4 = arith.constant 0 : index
    %3 = vector.load %arg3[%c0_3, %c0_4] : memref<1x128xf32, #tpu.memory_space<vmem>>, vector<1x128xf32>
    %4 = vector.broadcast %3 : vector<1x128xf32> to vector<8x128xf32>
    %5 = arith.addf %2, %4 : vector<8x128xf32>
    %cst_5 = arith.constant 0.000000e+00 : f32
    %6 = vector.broadcast %cst_5 : f32 to vector<8x128xf32>
    %7 = arith.maximumf %5, %6 : vector<8x128xf32>
    %c0_6 = arith.constant 0 : index
    %c0_7 = arith.constant 0 : index
    %8 = vector.load %arg4[%c0_6, %c0_7] : memref<128x128xf32, #tpu.memory_space<vmem>>, vector<128x128xf32>
    %cst_8 = arith.constant dense<0.000000e+00> : vector<8x128xf32>
    %9 = tpu.matmul %7, %8, %cst_8 {dimension_numbers = #tpu.dot_dimension_numbers<[1], [0], [0], [1], [0, 0, 1, 1], [], []>} : vector<8x128xf32>, vector<128x128xf32>, vector<8x128xf32> -> vector<8x128xf32>
    %c0_9 = arith.constant 0 : index
    %c0_10 = arith.constant 0 : index
    %10 = vector.load %arg5[%c0_9, %c0_10] : memref<1x128xf32, #tpu.memory_space<vmem>>, vector<1x128xf32>
    %11 = vector.broadcast %10 : vector<1x128xf32> to vector<8x128xf32>
    %12 = arith.addf %9, %11 : vector<8x128xf32>
    %cst_11 = arith.constant 0.000000e+00 : f32
    %13 = vector.broadcast %cst_11 : f32 to vector<8x128xf32>
    %14 = arith.maximumf %12, %13 : vector<8x128xf32>
    %c0_12 = arith.constant 0 : index
    %c0_13 = arith.constant 0 : index
    %15 = vector.load %arg6[%c0_12, %c0_13] : memref<128x16xf32, #tpu.memory_space<vmem>>, vector<128x16xf32>
    %cst_14 = arith.constant dense<0.000000e+00> : vector<8x16xf32>
    %16 = tpu.matmul %14, %15, %cst_14 {dimension_numbers = #tpu.dot_dimension_numbers<[1], [0], [0], [1], [0, 0, 1, 1], [], []>} : vector<8x128xf32>, vector<128x16xf32>, vector<8x16xf32> -> vector<8x16xf32>
    %c0_15 = arith.constant 0 : index
    %c0_16 = arith.constant 0 : index
    %17 = vector.load %arg7[%c0_15, %c0_16] : memref<1x16xf32, #tpu.memory_space<vmem>>, vector<1x16xf32>
    %18 = vector.broadcast %17 : vector<1x16xf32> to vector<8x16xf32>
    %19 = arith.addf %16, %18 : vector<8x16xf32>
    %20 = math.tanh %19 : vector<8x16xf32>
    %21 = math.exp %20 : vector<8x16xf32>
    %c0_17 = arith.constant 0 : index
    %c0_18 = arith.constant 0 : index
    %22 = vector.load %arg8[%c0_17, %c0_18] : memref<8x16xf32, #tpu.memory_space<vmem>>, vector<8x16xf32>
    tpu.vector_store %arg8[%c0_17, %c0_18], %21 {strides = array<i32>} : memref<8x16xf32, #tpu.memory_space<vmem>>, vector<8x16xf32>,
    return
  }
  func.func @transform_0(%arg0: i32) -> (i32, i32) {
    %c0_i32 = arith.constant 0 : i32
    %c0_i32_0 = arith.constant 0 : i32
    return %arg0, %c0_i32 : i32, i32
  }
  func.func @transform_1(%arg0: i32) -> (i32, i32) {
    %c0_i32 = arith.constant 0 : i32
    %c0_i32_0 = arith.constant 0 : i32
    %c0_i32_1 = arith.constant 0 : i32
    return %c0_i32, %c0_i32_0 : i32, i32
  }
  func.func @transform_2(%arg0: i32) -> (i32, i32) {
    %c0_i32 = arith.constant 0 : i32
    %c0_i32_0 = arith.constant 0 : i32
    %c0_i32_1 = arith.constant 0 : i32
    return %c0_i32, %c0_i32_0 : i32, i32
  }
  func.func @transform_3(%arg0: i32) -> (i32, i32) {
    %c0_i32 = arith.constant 0 : i32
    %c0_i32_0 = arith.constant 0 : i32
    %c0_i32_1 = arith.constant 0 : i32
    return %c0_i32, %c0_i32_0 : i32, i32
  }
  func.func @transform_4(%arg0: i32) -> (i32, i32) {
    %c0_i32 = arith.constant 0 : i32
    %c0_i32_0 = arith.constant 0 : i32
    %c0_i32_1 = arith.constant 0 : i32
    return %c0_i32, %c0_i32_0 : i32, i32
  }
  func.func @transform_5(%arg0: i32) -> (i32, i32) {
    %c0_i32 = arith.constant 0 : i32
    %c0_i32_0 = arith.constant 0 : i32
    %c0_i32_1 = arith.constant 0 : i32
    return %c0_i32, %c0_i32_0 : i32, i32
  }
  func.func @transform_6(%arg0: i32) -> (i32, i32) {
    %c0_i32 = arith.constant 0 : i32
    %c0_i32_0 = arith.constant 0 : i32
    %c0_i32_1 = arith.constant 0 : i32
    return %c0_i32, %c0_i32_0 : i32, i32
  }
  func.func @transform_7(%arg0: i32) -> (i32, i32) {
    %c0_i32 = arith.constant 0 : i32
    %c0_i32_0 = arith.constant 0 : i32
    return %arg0, %c0_i32 : i32, i32
  }
}

module attributes {stable_mosaic.version = 11 : i64} {
  func.func @scaling_net_kernel(%arg0: i32, %arg1: memref<8x16xf32, #tpu.memory_space<vmem>>, %arg2: memref<16x128xf32, #tpu.memory_space<vmem>>, %arg3: memref<1x128xf32, #tpu.memory_space<vmem>>, %arg4: memref<128x128xf32, #tpu.memory_space<vmem>>, %arg5: memref<1x128xf32, #tpu.memory_space<vmem>>, %arg6: memref<128x16xf32, #tpu.memory_space<vmem>>, %arg7: memref<1x16xf32, #tpu.memory_space<vmem>>, %arg8: memref<8x16xf32, #tpu.memory_space<vmem>>) attributes {dimension_semantics = [#tpu.dimension_semantics<parallel>], iteration_bounds = array<i64: 1>, scalar_prefetch = 0 : i64, scratch_operands = 0 : i64, tpu.core_type = #tpu.core_type<tc>, window_params = [{transform_indices = @transform_0, window_bounds = array<i64: 8, 16>}, {pipeline_mode = #tpu.pipeline_mode<synchronous>, transform_indices = @transform_1, window_bounds = array<i64: 16, 128>}, {pipeline_mode = #tpu.pipeline_mode<synchronous>, transform_indices = @transform_2, window_bounds = array<i64: 1, 128>}, {pipeline_mode = #tpu.pipeline_mode<synchronous>, transform_indices = @transform_3, window_bounds = array<i64: 128, 128>}, {pipeline_mode = #tpu.pipeline_mode<synchronous>, transform_indices = @transform_4, window_bounds = array<i64: 1, 128>}, {pipeline_mode = #tpu.pipeline_mode<synchronous>, transform_indices = @transform_5, window_bounds = array<i64: 128, 16>}, {pipeline_mode = #tpu.pipeline_mode<synchronous>, transform_indices = @transform_6, window_bounds = array<i64: 1, 16>}, {transform_indices = @transform_7, window_bounds = array<i64: 8, 16>}]} {
    %c0 = arith.constant 0 : index
    %c0_0 = arith.constant 0 : index
    %0 = vector.load %arg1[%c0, %c0_0] : memref<8x16xf32, #tpu.memory_space<vmem>>, vector<8x16xf32>
    %c0_1 = arith.constant 0 : index
    %c0_2 = arith.constant 0 : index
    %1 = vector.load %arg2[%c0_1, %c0_2] : memref<16x128xf32, #tpu.memory_space<vmem>>, vector<16x128xf32>
    %cst = arith.constant dense<0.000000e+00> : vector<8x128xf32>
    %2 = tpu.matmul %0, %1, %cst {dimension_numbers = #tpu.dot_dimension_numbers<[1], [0], [0], [1], [0, 0, 1, 1], [], []>} : vector<8x16xf32>, vector<16x128xf32>, vector<8x128xf32> -> vector<8x128xf32>
    %c0_3 = arith.constant 0 : index
    %c0_4 = arith.constant 0 : index
    %3 = vector.load %arg3[%c0_3, %c0_4] : memref<1x128xf32, #tpu.memory_space<vmem>>, vector<1x128xf32>
    %4 = vector.broadcast %3 : vector<1x128xf32> to vector<8x128xf32>
    %5 = arith.addf %2, %4 : vector<8x128xf32>
    %cst_5 = arith.constant 0.000000e+00 : f32
    %6 = vector.broadcast %cst_5 : f32 to vector<8x128xf32>
    %7 = arith.maximumf %5, %6 : vector<8x128xf32>
    %c0_6 = arith.constant 0 : index
    %c0_7 = arith.constant 0 : index
    %8 = vector.load %arg4[%c0_6, %c0_7] : memref<128x128xf32, #tpu.memory_space<vmem>>, vector<128x128xf32>
    %cst_8 = arith.constant dense<0.000000e+00> : vector<8x128xf32>
    %9 = tpu.matmul %7, %8, %cst_8 {dimension_numbers = #tpu.dot_dimension_numbers<[1], [0], [0], [1], [0, 0, 1, 1], [], []>} : vector<8x128xf32>, vector<128x128xf32>, vector<8x128xf32> -> vector<8x128xf32>
    %c0_9 = arith.constant 0 : index
    %c0_10 = arith.constant 0 : index
    %10 = vector.load %arg5[%c0_9, %c0_10] : memref<1x128xf32, #tpu.memory_space<vmem>>, vector<1x128xf32>
    %11 = vector.broadcast %10 : vector<1x128xf32> to vector<8x128xf32>
    %12 = arith.addf %9, %11 : vector<8x128xf32>
    %cst_11 = arith.constant 0.000000e+00 : f32
    %13 = vector.broadcast %cst_11 : f32 to vector<8x128xf32>
    %14 = arith.maximumf %12, %13 : vector<8x128xf32>
    %c0_12 = arith.constant 0 : index
    %c0_13 = arith.constant 0 : index
    %15 = vector.load %arg6[%c0_12, %c0_13] : memref<128x16xf32, #tpu.memory_space<vmem>>, vector<128x16xf32>
    %cst_14 = arith.constant dense<0.000000e+00> : vector<8x16xf32>
    %16 = tpu.matmul %14, %15, %cst_14 {dimension_numbers = #tpu.dot_dimension_numbers<[1], [0], [0], [1], [0, 0, 1, 1], [], []>} : vector<8x128xf32>, vector<128x16xf32>, vector<8x16xf32> -> vector<8x16xf32>
    %c0_15 = arith.constant 0 : index
    %c0_16 = arith.constant 0 : index
    %17 = vector.load %arg7[%c0_15, %c0_16] : memref<1x16xf32, #tpu.memory_space<vmem>>, vector<1x16xf32>
    %18 = vector.broadcast %17 : vector<1x16xf32> to vector<8x16xf32>
    %19 = arith.addf %16, %18 : vector<8x16xf32>
    %20 = math.tanh %19 : vector<8x16xf32>
    %21 = math.exp %20 : vector<8x16xf32>
    %c0_17 = arith.constant 0 : index
    %c0_18 = arith.constant 0 : index
    %22 = vector.load %arg8[%c0_17, %c0_18] : memref<8x16xf32, #tpu.memory_space<vmem>>, vector<8x16xf32>
    tpu.vector_store %arg8[%c0_17, %c0_18], %21 {strides = array<i32>} : memref<8x16xf32, #tpu.memory_space<vmem>>, vector<8x16xf32>,
    return
  }
  func.func @transform_0(%arg0: i32) -> (i32, i32) {
    %c0_i32 = arith.constant 0 : i32
    %c0_i32_0 = arith.constant 0 : i32
    return %arg0, %c0_i32 : i32, i32
  }
  func.func @transform_1(%arg0: i32) -> (i32, i32) {
    %c0_i32 = arith.constant 0 : i32
    %c0_i32_0 = arith.constant 0 : i32
    %c0_i32_1 = arith.constant 0 : i32
    return %c0_i32, %c0_i32_0 : i32, i32
  }
  func.func @transform_2(%arg0: i32) -> (i32, i32) {
    %c0_i32 = arith.constant 0 : i32
    %c0_i32_0 = arith.constant 0 : i32
    %c0_i32_1 = arith.constant 0 : i32
    return %c0_i32, %c0_i32_0 : i32, i32
  }
  func.func @transform_3(%arg0: i32) -> (i32, i32) {
    %c0_i32 = arith.constant 0 : i32
    %c0_i32_0 = arith.constant 0 : i32
    %c0_i32_1 = arith.constant 0 : i32
    return %c0_i32, %c0_i32_0 : i32, i32
  }
  func.func @transform_4(%arg0: i32) -> (i32, i32) {
    %c0_i32 = arith.constant 0 : i32
    %c0_i32_0 = arith.constant 0 : i32
    %c0_i32_1 = arith.constant 0 : i32
    return %c0_i32, %c0_i32_0 : i32, i32
  }
  func.func @transform_5(%arg0: i32) -> (i32, i32) {
    %c0_i32 = arith.constant 0 : i32
    %c0_i32_0 = arith.constant 0 : i32
    %c0_i32_1 = arith.constant 0 : i32
    return %c0_i32, %c0_i32_0 : i32, i32
  }
  func.func @transform_6(%arg0: i32) -> (i32, i32) {
    %c0_i32 = arith.constant 0 : i32
    %c0_i32_0 = arith.constant 0 : i32
    %c0_i32_1 = arith.constant 0 : i32
    return %c0_i32, %c0_i32_0 : i32, i32
  }
  func.func @transform_7(%arg0: i32) -> (i32, i32) {
    %c0_i32 = arith.constant 0 : i32
    %c0_i32_0 = arith.constant 0 : i32
    return %arg0, %c0_i32 : i32, i32
  }
}

</mosaic_0001>

<bundles_post_ra>
// kernel: _forward_impl.1
= control target key start
LH: loop header
LB: loop body
LE: loop exit
PB: predicated region body
PF: predicated region fallthrough
CT: control target
= control target key end

     0   :  { %12 = vsyncpa [#allocation3], 0  ;;  %s398_s0 = inlined_call_operand.hbm [shape: f32[8,16], index: 0, kind: input, shape index: {}]   ;;  %s399_s1 = inlined_call_operand.vmem [shape: f32[16,128], index: 1, kind: input, shape index: {}]   ;;  %s400_s2 = inlined_call_operand.vmem [shape: f32[1,128], index: 2, kind: input, shape index: {}]   ;;  %s401_s3 = inlined_call_operand.vmem [shape: f32[128,128], index: 3, kind: input, shape index: {}]   ;;  %s402_s4 = inlined_call_operand.vmem [shape: f32[1,128], index: 4, kind: input, shape index: {}]   ;;  %s403_s5 = inlined_call_operand.vmem [shape: f32[128,16], index: 5, kind: input, shape index: {}]   ;;  %s404_s6 = inlined_call_operand.vmem [shape: f32[1,16], index: 6, kind: input, shape index: {}]   ;;  %s405_s7 = inlined_call_operand.hbm [shape: f32[8,16], index: 7, kind: output, shape index: {}]  }
   0x1   :  { %13 = vsyncpa [#allocation4], 0  ;;  %s19_s26 = sshll.u32 %s398_s0, 4  ;;  %s237_s27 = smov [#allocation2]   ;;  %s20_s26 = int_to_ptr.hbm [resolvable:$true] %s19_s26 }
   0x2   :  { %s21_s28 = sshll.u32 %s237_s27, 4  ;;  %s22_s28 = int_to_ptr.vmem [resolvable:$true] %s21_s28 }
   0x3   :  { %24 = dma.hbm_to_vmem [thread:$0]  %s20_s26, 128, %s22_s28, [#allocation3]  }
   0x4   :  { %233 = dma.done.wait [#allocation3], 128  }
   0x5   :  { %234 = vsyncadd [#allocation3], 4294967168  ;;  %v43_v0 = vld [vmem:[%s399_s1 + $0x8] sm:$0xff]  ;;  %v42_v1 = vld [vmem:[%s399_s1] sm:$0xff]  ;;  %vm48_vm0 = vcmask 130048  }
   0x6   :  { %66 = vmatpush.msra.mxu0 %v43_v0  ;;  %v41_v2 = vld [vmem:[#allocation2] sm:$0xff]  ;;  %v88_v3 = vld [vmem:[%s401_s3 + $0x78] sm:$0xff]  ;;  %v87_v4 = vld [vmem:[%s401_s3 + $0x70] sm:$0xff] }
   0x7   :  { %93 = vmatpush.msra.mxu1 %v88_v3  ;;  %v86_v5 = vld [vmem:[%s401_s3 + $0x68] sm:$0xff]  ;;  %v85_v6 = vld [vmem:[%s401_s3 + $0x60] sm:$0xff]  ;;  %v84_v7 = vld [vmem:[%s401_s3 + $0x58] sm:$0xff] }
   0x8   :  { %67 = vmatpush.msra.mxu0 %v42_v1  ;;  %v83_v8 = vld [vmem:[%s401_s3 + $0x50] sm:$0xff]  ;;  %v82_v9 = vld [vmem:[%s401_s3 + $0x48] sm:$0xff]  ;;  %v81_v10 = vld [vmem:[%s401_s3 + $0x40] sm:$0xff] }
   0x9   :  { %175 = vmatmul.msk.f32.vlgmr.msra.gmra.mxu0 %vm48_vm0, %v41_v2  ;;  %94 = vmatpush.msra.mxu1 %v87_v4  ;;  %v80_v11 = vld [vmem:[%s401_s3 + $0x38] sm:$0xff]  ;;  %v79_v12 = vld [vmem:[%s401_s3 + $0x30] sm:$0xff]  ;;  %v78_v13 = vld [vmem:[%s401_s3 + $0x28] sm:$0xff] }
   0xa   :  { %v77_v14 = vld [vmem:[%s401_s3 + $0x20] sm:$0xff]  ;;  %v76_v15 = vld [vmem:[%s401_s3 + $0x18] sm:$0xff]  ;;  %v75_v16 = vld [vmem:[%s401_s3 + $0x10] sm:$0xff] }
   0xb   :  { %95 = vmatpush.msra.mxu1 %v86_v5  ;;  %v74_v17 = vld [vmem:[%s401_s3 + $0x8] sm:$0xff]  ;;  %v73_v18 = vld [vmem:[%s401_s3] sm:$0xff]  ;;  %v129_v19 = vld [vmem:[%s403_s5 + $0x78] sm:$0xff] }
   0xc   :  { %v128_v20 = vld [vmem:[%s403_s5 + $0x70] sm:$0xff]  ;;  %134 = vmatpush.msra.mxu2 %v129_v19  ;;  %v127_v21 = vld [vmem:[%s403_s5 + $0x68] sm:$0xff]  ;;  %v126_v22 = vld [vmem:[%s403_s5 + $0x60] sm:$0xff] }
   0xd   :  { %96 = vmatpush.msra.mxu1 %v85_v6  ;;  %v125_v23 = vld [vmem:[%s403_s5 + $0x58] sm:$0xff]  ;;  %v124_v24 = vld [vmem:[%s403_s5 + $0x50] sm:$0xff]  ;;  %v123_v25 = vld [vmem:[%s403_s5 + $0x48] sm:$0xff] }
   0xe   :  { %135 = vmatpush.msra.mxu2 %v128_v20  ;;  %v122_v26 = vld [vmem:[%s403_s5 + $0x40] sm:$0xff]  ;;  %v121_v27 = vld [vmem:[%s403_s5 + $0x38] sm:$0xff]  ;;  %v120_v28 = vld [vmem:[%s403_s5 + $0x30] sm:$0xff] }
   0xf   :  { %97 = vmatpush.msra.mxu1 %v84_v7  ;;  %v119_v29 = vld [vmem:[%s403_s5 + $0x28] sm:$0xff]  ;;  %v118_v30 = vld [vmem:[%s403_s5 + $0x20] sm:$0xff]  ;;  %v117_v31 = vld [vmem:[%s403_s5 + $0x18] sm:$0xff] }
  0x10   :  { %136 = vmatpush.msra.mxu2 %v127_v21  ;;  %v178_v32 = vld [vmem:[%s400_s2] ss:$0 sm:$0xff]  ;;  %v116_v36 = vld [vmem:[%s403_s5 + $0x10] sm:$0xff]  ;;  %v115_v37 = vld [vmem:[%s403_s5 + $0x8] sm:$0xff] }
  0x11   :  { %98 = vmatpush.msra.mxu1 %v83_v8  ;;  %v114_v38 = vld [vmem:[%s403_s5] sm:$0xff]  ;;  %s238_s5 = smov [#allocation5]  }
  0x12   :  { %137 = vmatpush.msra.mxu2 %v126_v22  ;;  %v179_v39 = vld [vmem:[%s402_s4] ss:$0 sm:$0xff]  ;;  %s163_s25 = sshll.u32 %s238_s5, 4  ;;  %s165_s4 = sshll.u32 %s405_s7, 4  ;;  %s164_s25 = int_to_ptr.vmem [resolvable:$true] %s163_s25  ;;  %s166_s4 = int_to_ptr.hbm [resolvable:$true] %s165_s4 }
  0x13   :  { %99 = vmatpush.msra.mxu1 %v82_v9  ;;  %v180_v43 = vld [vmem:[%s404_s6] ss:$0 sm:$0xff] }
  0x14   :  { %138 = vmatpush.msra.mxu2 %v125_v23 }
  0x15   :  { %100 = vmatpush.msra.mxu1 %v81_v10 }
  0x16   :  { %139 = vmatpush.msra.mxu2 %v124_v24 }
  0x17   :  { %101 = vmatpush.msra.mxu1 %v80_v11 }
  0x18   :  { %140 = vmatpush.msra.mxu2 %v123_v25 }
  0x19   :  { %102 = vmatpush.msra.mxu1 %v79_v12 }
  0x1a   :  { %141 = vmatpush.msra.mxu2 %v122_v26 }
  0x1b   :  { %103 = vmatpush.msra.mxu1 %v78_v13 }
  0x1c   :  { %142 = vmatpush.msra.mxu2 %v121_v27 }
  0x1d   :  { %104 = vmatpush.msra.mxu1 %v77_v14 }
  0x1e   :  { %143 = vmatpush.msra.mxu2 %v120_v28 }
  0x1f   :  { %105 = vmatpush.msra.mxu1 %v76_v15 }
  0x20   :  { %144 = vmatpush.msra.mxu2 %v119_v29 }
  0x21   :  { %106 = vmatpush.msra.mxu1 %v75_v16 }
  0x22   :  { %145 = vmatpush.msra.mxu2 %v118_v30 }
  0x23   :  { %107 = vmatpush.msra.mxu1 %v74_v17 }
  0x24   :  { %146 = vmatpush.msra.mxu2 %v117_v31 }
  0x25   :  { %108 = vmatpush.msra.mxu1 %v73_v18 }
  0x26   :  { %147 = vmatpush.msra.mxu2 %v116_v36 }
  0x28   :  { %148 = vmatpush.msra.mxu2 %v115_v37 }
  0x2a   :  { %149 = vmatpush.msra.mxu2 %v114_v38 }
  0x86   :  { %v69_v33 = vpop.f32.mrf.mxu0 }
  0x87   :  { %v70_v34 = vadd.f32 %v178_v32, %v69_v33 }
  0x89   :  { %v72_v35 = vmax.f32 %v70_v34, 0.0 }
  0x8b   :  { %109 = vmatmul.f32.vlgmr.msra.gmra.mxu1 %v72_v35 }
 0x108   :  { %v110_v40 = vpop.f32.mrf.mxu1 }
 0x109   :  { %v111_v41 = vadd.f32 %v179_v39, %v110_v40 }
 0x10b   :  { %v113_v42 = vmax.f32 %v111_v41, 0.0 }
 0x10d   :  { %150 = vmatmul.f32.vlgmr.msra.gmra.mxu2 %v113_v42 }
 0x190   :  { %v151_v44 = vpop.f32.mrf.mxu2 }
 0x191   :  { %v152_v45 = vadd.f32 %v180_v43, %v151_v44 }
 0x193   :  { %181 = vtanh.f32 %v152_v45 }
 0x199   :  { %v182_v46 = vpop.eup %181 }
 0x19a   :  { %v155_v47 = vmul.f32 1.442695, %v182_v46 }
 0x19c   :  { %183 = vpow2.f32 %v155_v47 }
 0x1a2   :  { %v184_v48 = vpop.eup %183 }
 0x1a3   :  { %157 = vst.msk [vmem:[#allocation5] sm:$0xff] %vm48_vm0, %v184_v48 }
 0x1a4   :  { %168 = dma.vmem_to_hbm [thread:$0]  %s164_s25, 128, %s166_s4, [#allocation4]  }
 0x1a5   :  { %235 = dma.done.wait [#allocation4], 128  }
 0x1a6   :  { %236 = vsyncadd [#allocation4], 4294967168 }
 0x1a7   :  { %173 = vsyncpa [#allocation3], 1 }
 0x1a8   :  { %174 = vsyncpa [#allocation4], 1 }

// kernel: _forward_impl.1
= control target key start
LH: loop header
LB: loop body
LE: loop exit
PB: predicated region body
PF: predicated region fallthrough
CT: control target
= control target key end

     0   :  { %12 = vsyncpa [#allocation3], 0  ;;  %s398_s0 = inlined_call_operand.hbm [shape: f32[8,16], index: 0, kind: input, shape index: {}]   ;;  %s399_s1 = inlined_call_operand.vmem [shape: f32[16,128], index: 1, kind: input, shape index: {}]   ;;  %s400_s2 = inlined_call_operand.vmem [shape: f32[1,128], index: 2, kind: input, shape index: {}]   ;;  %s401_s3 = inlined_call_operand.vmem [shape: f32[128,128], index: 3, kind: input, shape index: {}]   ;;  %s402_s4 = inlined_call_operand.vmem [shape: f32[1,128], index: 4, kind: input, shape index: {}]   ;;  %s403_s5 = inlined_call_operand.vmem [shape: f32[128,16], index: 5, kind: input, shape index: {}]   ;;  %s404_s6 = inlined_call_operand.vmem [shape: f32[1,16], index: 6, kind: input, shape index: {}]   ;;  %s405_s7 = inlined_call_operand.hbm [shape: f32[8,16], index: 7, kind: output, shape index: {}]  }
   0x1   :  { %13 = vsyncpa [#allocation4], 0  ;;  %s19_s26 = sshll.u32 %s398_s0, 4  ;;  %s237_s27 = smov [#allocation2]   ;;  %s20_s26 = int_to_ptr.hbm [resolvable:$true] %s19_s26 }
   0x2   :  { %s21_s28 = sshll.u32 %s237_s27, 4  ;;  %s22_s28 = int_to_ptr.vmem [resolvable:$true] %s21_s28 }
   0x3   :  { %24 = dma.hbm_to_vmem [thread:$0]  %s20_s26, 128, %s22_s28, [#allocation3]  }
   0x4   :  { %233 = dma.done.wait [#allocation3], 128  }
   0x5   :  { %234 = vsyncadd [#allocation3], 4294967168  ;;  %v43_v0 = vld [vmem:[%s399_s1 + $0x8] sm:$0xff]  ;;  %v42_v1 = vld [vmem:[%s399_s1] sm:$0xff]  ;;  %vm48_vm0 = vcmask 130048  }
   0x6   :  { %66 = vmatpush.msra.mxu0 %v43_v0  ;;  %v41_v2 = vld [vmem:[#allocation2] sm:$0xff]  ;;  %v88_v3 = vld [vmem:[%s401_s3 + $0x78] sm:$0xff]  ;;  %v87_v4 = vld [vmem:[%s401_s3 + $0x70] sm:$0xff] }
   0x7   :  { %93 = vmatpush.msra.mxu1 %v88_v3  ;;  %v86_v5 = vld [vmem:[%s401_s3 + $0x68] sm:$0xff]  ;;  %v85_v6 = vld [vmem:[%s401_s3 + $0x60] sm:$0xff]  ;;  %v84_v7 = vld [vmem:[%s401_s3 + $0x58] sm:$0xff] }
   0x8   :  { %67 = vmatpush.msra.mxu0 %v42_v1  ;;  %v83_v8 = vld [vmem:[%s401_s3 + $0x50] sm:$0xff]  ;;  %v82_v9 = vld [vmem:[%s401_s3 + $0x48] sm:$0xff]  ;;  %v81_v10 = vld [vmem:[%s401_s3 + $0x40] sm:$0xff] }
   0x9   :  { %175 = vmatmul.msk.f32.vlgmr.msra.gmra.mxu0 %vm48_vm0, %v41_v2  ;;  %94 = vmatpush.msra.mxu1 %v87_v4  ;;  %v80_v11 = vld [vmem:[%s401_s3 + $0x38] sm:$0xff]  ;;  %v79_v12 = vld [vmem:[%s401_s3 + $0x30] sm:$0xff]  ;;  %v78_v13 = vld [vmem:[%s401_s3 + $0x28] sm:$0xff] }
   0xa   :  { %v77_v14 = vld [vmem:[%s401_s3 + $0x20] sm:$0xff]  ;;  %v76_v15 = vld [vmem:[%s401_s3 + $0x18] sm:$0xff]  ;;  %v75_v16 = vld [vmem:[%s401_s3 + $0x10] sm:$0xff] }
   0xb   :  { %95 = vmatpush.msra.mxu1 %v86_v5  ;;  %v74_v17 = vld [vmem:[%s401_s3 + $0x8] sm:$0xff]  ;;  %v73_v18 = vld [vmem:[%s401_s3] sm:$0xff]  ;;  %v129_v19 = vld [vmem:[%s403_s5 + $0x78] sm:$0xff] }
   0xc   :  { %v128_v20 = vld [vmem:[%s403_s5 + $0x70] sm:$0xff]  ;;  %134 = vmatpush.msra.mxu2 %v129_v19  ;;  %v127_v21 = vld [vmem:[%s403_s5 + $0x68] sm:$0xff]  ;;  %v126_v22 = vld [vmem:[%s403_s5 + $0x60] sm:$0xff] }
   0xd   :  { %96 = vmatpush.msra.mxu1 %v85_v6  ;;  %v125_v23 = vld [vmem:[%s403_s5 + $0x58] sm:$0xff]  ;;  %v124_v24 = vld [vmem:[%s403_s5 + $0x50] sm:$0xff]  ;;  %v123_v25 = vld [vmem:[%s403_s5 + $0x48] sm:$0xff] }
   0xe   :  { %135 = vmatpush.msra.mxu2 %v128_v20  ;;  %v122_v26 = vld [vmem:[%s403_s5 + $0x40] sm:$0xff]  ;;  %v121_v27 = vld [vmem:[%s403_s5 + $0x38] sm:$0xff]  ;;  %v120_v28 = vld [vmem:[%s403_s5 + $0x30] sm:$0xff] }
   0xf   :  { %97 = vmatpush.msra.mxu1 %v84_v7  ;;  %v119_v29 = vld [vmem:[%s403_s5 + $0x28] sm:$0xff]  ;;  %v118_v30 = vld [vmem:[%s403_s5 + $0x20] sm:$0xff]  ;;  %v117_v31 = vld [vmem:[%s403_s5 + $0x18] sm:$0xff] }
  0x10   :  { %136 = vmatpush.msra.mxu2 %v127_v21  ;;  %v178_v32 = vld [vmem:[%s400_s2] ss:$0 sm:$0xff]  ;;  %v116_v36 = vld [vmem:[%s403_s5 + $0x10] sm:$0xff]  ;;  %v115_v37 = vld [vmem:[%s403_s5 + $0x8] sm:$0xff] }
  0x11   :  { %98 = vmatpush.msra.mxu1 %v83_v8  ;;  %v114_v38 = vld [vmem:[%s403_s5] sm:$0xff]  ;;  %s238_s5 = smov [#allocation5]  }
  0x12   :  { %137 = vmatpush.msra.mxu2 %v126_v22  ;;  %v179_v39 = vld [vmem:[%s402_s4] ss:$0 sm:$0xff]  ;;  %s163_s25 = sshll.u32 %s238_s5, 4  ;;  %s165_s4 = sshll.u32 %s405_s7, 4  ;;  %s164_s25 = int_to_ptr.vmem [resolvable:$true] %s163_s25  ;;  %s166_s4 = int_to_ptr.hbm [resolvable:$true] %s165_s4 }
  0x13   :  { %99 = vmatpush.msra.mxu1 %v82_v9  ;;  %v180_v43 = vld [vmem:[%s404_s6] ss:$0 sm:$0xff] }
  0x14   :  { %138 = vmatpush.msra.mxu2 %v125_v23 }
  0x15   :  { %100 = vmatpush.msra.mxu1 %v81_v10 }
  0x16   :  { %139 = vmatpush.msra.mxu2 %v124_v24 }
  0x17   :  { %101 = vmatpush.msra.mxu1 %v80_v11 }
  0x18   :  { %140 = vmatpush.msra.mxu2 %v123_v25 }
  0x19   :  { %102 = vmatpush.msra.mxu1 %v79_v12 }
  0x1a   :  { %141 = vmatpush.msra.mxu2 %v122_v26 }
  0x1b   :  { %103 = vmatpush.msra.mxu1 %v78_v13 }
  0x1c   :  { %142 = vmatpush.msra.mxu2 %v121_v27 }
  0x1d   :  { %104 = vmatpush.msra.mxu1 %v77_v14 }
  0x1e   :  { %143 = vmatpush.msra.mxu2 %v120_v28 }
  0x1f   :  { %105 = vmatpush.msra.mxu1 %v76_v15 }
  0x20   :  { %144 = vmatpush.msra.mxu2 %v119_v29 }
  0x21   :  { %106 = vmatpush.msra.mxu1 %v75_v16 }
  0x22   :  { %145 = vmatpush.msra.mxu2 %v118_v30 }
  0x23   :  { %107 = vmatpush.msra.mxu1 %v74_v17 }
  0x24   :  { %146 = vmatpush.msra.mxu2 %v117_v31 }
  0x25   :  { %108 = vmatpush.msra.mxu1 %v73_v18 }
  0x26   :  { %147 = vmatpush.msra.mxu2 %v116_v36 }
  0x28   :  { %148 = vmatpush.msra.mxu2 %v115_v37 }
  0x2a   :  { %149 = vmatpush.msra.mxu2 %v114_v38 }
  0x86   :  { %v69_v33 = vpop.f32.mrf.mxu0 }
  0x87   :  { %v70_v34 = vadd.f32 %v178_v32, %v69_v33 }
  0x89   :  { %v72_v35 = vmax.f32 %v70_v34, 0.0 }
  0x8b   :  { %109 = vmatmul.f32.vlgmr.msra.gmra.mxu1 %v72_v35 }
 0x108   :  { %v110_v40 = vpop.f32.mrf.mxu1 }
 0x109   :  { %v111_v41 = vadd.f32 %v179_v39, %v110_v40 }
 0x10b   :  { %v113_v42 = vmax.f32 %v111_v41, 0.0 }
 0x10d   :  { %150 = vmatmul.f32.vlgmr.msra.gmra.mxu2 %v113_v42 }
 0x190   :  { %v151_v44 = vpop.f32.mrf.mxu2 }
 0x191   :  { %v152_v45 = vadd.f32 %v180_v43, %v151_v44 }
 0x193   :  { %181 = vtanh.f32 %v152_v45 }
 0x199   :  { %v182_v46 = vpop.eup %181 }
 0x19a   :  { %v155_v47 = vmul.f32 1.442695, %v182_v46 }
 0x19c   :  { %183 = vpow2.f32 %v155_v47 }
 0x1a2   :  { %v184_v48 = vpop.eup %183 }
 0x1a3   :  { %157 = vst.msk [vmem:[#allocation5] sm:$0xff] %vm48_vm0, %v184_v48 }
 0x1a4   :  { %168 = dma.vmem_to_hbm [thread:$0]  %s164_s25, 128, %s166_s4, [#allocation4]  }
 0x1a5   :  { %235 = dma.done.wait [#allocation4], 128  }
 0x1a6   :  { %236 = vsyncadd [#allocation4], 4294967168 }
 0x1a7   :  { %173 = vsyncpa [#allocation3], 1 }
 0x1a8   :  { %174 = vsyncpa [#allocation4], 1 }

</bundles_post_ra>
